<compile_context>
chip_gen: v5e
topology: v5e:2x2
jax: 0.10.0
libtpu: 0.0.40
codegen_flags: <defaults>
</compile_context>

<pallas_src>
import functools

import jax
import jax.numpy as jnp
from jax import lax
from jax.experimental import pallas as pl
from jax.experimental.pallas import tpu as pltpu


# --------------------------- shared gate math ------------------------------ #
def _gate_from_pooled(pooled, wi, bi, Cr):
    """pooled: (2Cr, T) f32 spatial means -> sigmoid gate (C, T) f32."""
    pooled_t = pooled.T                                   # (T, 2Cr) tiny transpose
    q = pooled_t[:, :Cr]                                  # (T, Cr)
    v = pooled_t[:, Cr:]                                  # (T, Cr)  out_v = out_k

    # Trans_att(out_q, out_q, out_v): ATT = softmax(-(Q@Q^T), dim=1)
    att = -jnp.dot(q, q.T, preferred_element_type=jnp.float32)       # (T, T)
    att = att - jnp.max(att, axis=0, keepdims=True)       # softmax over axis 0
    att = jnp.exp(att)
    att = att / jnp.sum(att, axis=0, keepdims=True)
    q_upd = jnp.dot(att, v, preferred_element_type=jnp.float32) + v  # (T, Cr)

    # conv_inflate (1x1 spatial -> channel matmul) + folded BN + ReLU, sigmoid
    g = jnp.dot(wi, q_upd.T, preferred_element_type=jnp.float32) + bi  # (C, T)
    g = jnp.maximum(g, 0.0)
    return jax.nn.sigmoid(g)


# ------------------------- Pass A: stats / gate ---------------------------- #
def cme_stats_kernel(x_ref, wqk_ref, bqk_ref, wi_ref, bi_ref, gate_ref, acc_ref,
                     *, inv_hw, hw, needs_mask):
    # x_ref block: (1, 1, C, tile)  (tile = lane axis)
    # wqk: (2Cr, C), bqk: (2Cr, 1), wi: (C, Cr), bi: (C, 1)
    # gate_ref block: (1, C, T) f32 ; acc_ref scratch: (2Cr, T) f32
    T = acc_ref.shape[1]
    t = pl.program_id(1)
    j = pl.program_id(2)
    tile = x_ref.shape[3]

    @pl.when((t == 0) & (j == 0))
    def _():
        acc_ref[...] = jnp.zeros_like(acc_ref)

    # Fused q/k 1x1 conv (+folded BN) + ReLU, partial spatial sum for segment t.
    xt = x_ref[0, 0]                                      # (C, tile), native dtype
    y = jnp.dot(wqk_ref[...], xt, preferred_element_type=jnp.float32) + bqk_ref[...]
    y = jnp.maximum(y, 0.0)                               # (2Cr, tile)
    if needs_mask:
        lane = lax.broadcasted_iota(jnp.int32, (1, tile), 1) + j * tile
        y = jnp.where(lane < hw, y, 0.0)                  # drop padded / OOB lanes
    col = jnp.sum(y, axis=1, keepdims=True)               # (2Cr, 1)

    onehot = lax.broadcasted_iota(jnp.int32, (1, T), 1) == t
    acc_ref[...] += jnp.where(onehot, col, 0.0)           # accumulate column t

    @pl.when((t == T - 1) & (j == pl.num_programs(2) - 1))
    def _():
        pooled = acc_ref[...] * inv_hw                    # (2Cr, T) spatial mean
        gate_ref[0] = _gate_from_pooled(pooled, wi_ref[...], bi_ref[...],
                                        wqk_ref.shape[0] // 2)


# ------------------------- Pass B: gate apply ------------------------------ #
def cme_apply_kernel(x_ref, g_ref, o_ref):
    # x_ref / o_ref block: (1, 1, C, tile); g_ref block: (1, C, T) f32
    T = g_ref.shape[2]
    t = pl.program_id(1)
    onehot = (lax.broadcasted_iota(jnp.int32, (1, T), 1) == t).astype(jnp.float32)
    g_col = jnp.sum(g_ref[0] * onehot, axis=1, keepdims=True)        # (C, 1)
    o_ref[0, 0] = (x_ref[0, 0] * g_col.astype(x_ref.dtype)).astype(o_ref.dtype)


# ---------------------- Fused single-pass (clip in VMEM) -------------------- #
def cme_fused_kernel(x_ref, wqk_ref, bqk_ref, wi_ref, bi_ref, o_ref,
                     *, inv_hw, chunk):
    # x_ref / o_ref block: (1, T, C, HW) — whole clip resident in VMEM.
    T = x_ref.shape[1]
    HW = x_ref.shape[3]
    Cr = wqk_ref.shape[0] // 2
    wqk = wqk_ref[...]
    bqk = bqk_ref[...]

    # Stats: spatial-mean of relu(Wqk@x + b) per segment (chunked over lanes
    # to bound vreg/VMEM-temporary residency).
    cols = []
    for t in range(T):
        acc = None
        for c0 in range(0, HW, chunk):
            csz = min(chunk, HW - c0)
            xt = x_ref[0, t, :, c0:c0 + csz]              # (C, csz)
            y = jnp.dot(wqk, xt, preferred_element_type=jnp.float32) + bqk
            y = jnp.maximum(y, 0.0)
            s = jnp.sum(y, axis=1, keepdims=True)         # (2Cr, 1)
            acc = s if acc is None else acc + s
        cols.append(acc)
    pooled = jnp.concatenate(cols, axis=1) * inv_hw       # (2Cr, T)

    gate = _gate_from_pooled(pooled, wi_ref[...], bi_ref[...], Cr)   # (C, T)

    # Apply the gate in-place before writeback (chunked).
    for t in range(T):
        g_t = gate[:, t:t + 1].astype(x_ref.dtype)        # (C, 1)
        for c0 in range(0, HW, chunk):
            csz = min(chunk, HW - c0)
            o_ref[0, t, :, c0:c0 + csz] = (
                x_ref[0, t, :, c0:c0 + csz] * g_t).astype(o_ref.dtype)


# ------------------------------ wrapper ------------------------------------ #
def _fold_bn(w, b, gamma, beta, mean, var, eps=1e-5):
    """Fold eval-mode BatchNorm into a (Cout, Cin) conv weight.

    Returns weight (Cout, Cin) and bias (Cout, 1), both float32."""
    s = gamma / jnp.sqrt(var + eps)
    w_f = w * s[:, None]
    b_f = (b * s + beta - mean * s)[:, None]
    return w_f.astype(jnp.float32), b_f.astype(jnp.float32)


def _vmem_limit_bytes():
    """Generation-aware scoped-VMEM limit with headroom."""
    cap = 64 << 20                      # conservative default: v7x per-TC VMEM
    try:
        cap = int(pltpu.get_tpu_info().vmem_capacity_bytes)
    except Exception:
        pass
    # ~1/3 headroom for compiler-internal scratch & pipeline slack:
    # v7x (64 MiB) -> ~42 MiB, v5e/v6e (128 MiB) -> ~85 MiB.
    return int(max(min(cap * 2 // 3, 100 << 20), 16 << 20))


def _pick_hw_tile(hw, bytes_per_col, budget_bytes):
    """Full HW if it fits the budget, else the largest multiple of 128 that does."""
    if hw * bytes_per_col <= budget_bytes:
        return int(hw)
    tile = (budget_bytes // bytes_per_col) // 128 * 128
    if tile < 128:
        # TODO(synk): even a 128-lane column set exceeds the budget; fall back
        # to 128 lanes and rely on the scoped-VMEM headroom.
        tile = 128
    return int(min(tile, hw)) if hw >= 128 else int(hw)


def cme_forward(x_nchw, params, n_segment, n_div=8, eps=1e-5,
                force_two_pass=False, tile_hw_a=None, tile_hw_b=None):
    nt, C, H, W = x_nchw.shape
    assert nt % n_segment == 0 and C % n_div == 0
    nb = nt // n_segment
    T = n_segment
    HW = H * W
    Cr = C // n_div

    # Fold BN into the 1x1 convs; fuse q/k into a single (2Cr, C) weight.
    wq, bq = _fold_bn(params["wq"], params["bq"], params["gq"], params["betq"],
                      params["mq"], params["vq"], eps)
    wk, bk = _fold_bn(params["wk"], params["bk"], params["gk"], params["betk"],
                      params["mk"], params["vk"], eps)
    wqk = jnp.concatenate([wq, wk], axis=0)               # (2Cr, C)
    bqk = jnp.concatenate([bq, bk], axis=0)               # (2Cr, 1)

    wi_full = params["wi"]                                # (C, Cr, kH, kW)
    kh, kw = wi_full.shape[2], wi_full.shape[3]
    wi_center = wi_full[:, :, kh // 2, kw // 2]           # (C, Cr)
    wi, bi = _fold_bn(wi_center, params["bi"], params["gi"], params["beti"],
                      params["mi"], params["vi"], eps)    # (C, Cr), (C, 1)

    # Native layout, no transpose, no dtype cast: (nt,C,H,W)->(nb,T,C,HW).
    x = x_nchw.reshape(nb, T, C, HW)
    itemsize = jnp.dtype(x.dtype).itemsize
    inv_hw = float(1.0 / HW)

    limit = _vmem_limit_bytes()
    weight_args = (wqk, bqk, wi, bi)
    weight_specs = [
        pl.BlockSpec((2 * Cr, C), lambda *a: (0, 0)),
        pl.BlockSpec((2 * Cr, 1), lambda *a: (0, 0)),
        pl.BlockSpec((C, Cr), lambda *a: (0, 0)),
        pl.BlockSpec((C, 1), lambda *a: (0, 0)),
    ]

    # ---- Fused single pass when the whole clip (in + out, 2x buffered) fits.
    clip_bytes = T * C * HW * itemsize
    if (not force_two_pass) and (4 * clip_bytes + (4 << 20) <= limit):
        chunk = HW if HW <= 1024 else 512
        out = pl.pallas_call(
            functools.partial(cme_fused_kernel, inv_hw=inv_hw, chunk=chunk),
            out_shape=jax.ShapeDtypeStruct((nb, T, C, HW), x.dtype),
            grid_spec=pltpu.PrefetchScalarGridSpec(
                num_scalar_prefetch=0,
                grid=(nb,),
                in_specs=[pl.BlockSpec((1, T, C, HW), lambda b: (b, 0, 0, 0))]
                         + weight_specs,
                out_specs=pl.BlockSpec((1, T, C, HW), lambda b: (b, 0, 0, 0)),
            ),
            compiler_params=pltpu.CompilerParams(
                dimension_semantics=("parallel",),
                vmem_limit_bytes=limit,
            ),
        )(x, *weight_args)
        return out.reshape(nt, C, H, W)

    # ---- Two-pass streaming path --------------------------------------------
    reserve = 2 << 20
    budget_a = max(min((limit - reserve) // 2, 16 << 20), 1 << 20)   # x (2-buf)
    budget_b = max(min((limit - reserve) // 4, 16 << 20), 1 << 20)   # x in+out (2-buf)
    tile_a = int(tile_hw_a) if tile_hw_a else _pick_hw_tile(HW, C * itemsize, budget_a)
    tile_b = int(tile_hw_b) if tile_hw_b else _pick_hw_tile(HW, 2 * C * itemsize, budget_b)
    n_hw_a = pl.cdiv(HW, tile_a)
    n_hw_b = pl.cdiv(HW, tile_b)
    needs_mask = (n_hw_a * tile_a != HW)

    # Pass A: accumulate stats over (T, HW), emit per-clip gate (nb, C, T).
    gate = pl.pallas_call(
        functools.partial(cme_stats_kernel, inv_hw=inv_hw, hw=HW,
                          needs_mask=needs_mask),
        out_shape=jax.ShapeDtypeStruct((nb, C, T), jnp.float32),
        grid_spec=pltpu.PrefetchScalarGridSpec(
            num_scalar_prefetch=0,
            grid=(nb, T, n_hw_a),
            in_specs=[pl.BlockSpec((1, 1, C, tile_a), lambda b, t, j: (b, t, 0, j))]
                     + weight_specs,
            out_specs=pl.BlockSpec((1, C, T), lambda b, t, j: (b, 0, 0)),
            scratch_shapes=[pltpu.VMEM((2 * Cr, T), jnp.float32)],
        ),
        compiler_params=pltpu.CompilerParams(
            dimension_semantics=("parallel", "arbitrary", "arbitrary"),
            vmem_limit_bytes=limit,
        ),
    )(x, *weight_args)

    # Pass B: lane-dense elementwise gate apply (pure read-mul-store).
    out = pl.pallas_call(
        cme_apply_kernel,
        out_shape=jax.ShapeDtypeStruct((nb, T, C, HW), x.dtype),
        grid_spec=pltpu.PrefetchScalarGridSpec(
            num_scalar_prefetch=0,
            grid=(nb, T, n_hw_b),
            in_specs=[
                pl.BlockSpec((1, 1, C, tile_b), lambda b, t, j: (b, t, 0, j)),
                pl.BlockSpec((1, C, T), lambda b, t, j: (b, 0, 0)),
            ],
            out_specs=pl.BlockSpec((1, 1, C, tile_b), lambda b, t, j: (b, t, 0, j)),
        ),
        compiler_params=pltpu.CompilerParams(
            dimension_semantics=("parallel", "parallel", "parallel"),
            vmem_limit_bytes=limit,
        ),
    )(x, gate)

    return out.reshape(nt, C, H, W)


# --------------------------- pure-JAX reference ----------------------------- #
def cme_reference(x_nchw, params, n_segment, n_div=8, eps=1e-5):
    nt, C, H, W = x_nchw.shape
    nb = nt // n_segment
    Cr = C // n_div

    def reduce_branch(x, w, b, g, bet, m, v):
        y = jnp.einsum("nchw,oc->nohw", x, w) + b[None, :, None, None]
        y = (y - m[None, :, None, None]) / jnp.sqrt(v[None, :, None, None] + eps)
        y = y * g[None, :, None, None] + bet[None, :, None, None]
        y = jnp.maximum(y, 0.0)
        return y.mean(axis=(2, 3))                               # (nt, Cr)

    x = x_nchw.astype(jnp.float32)
    out_q = reduce_branch(x, params["wq"], params["bq"], params["gq"],
                          params["betq"], params["mq"], params["vq"])
    out_k = reduce_branch(x, params["wk"], params["bk"], params["gk"],
                          params["betk"], params["mk"], params["vk"])
    out_v = out_k

    q = out_q.reshape(nb, n_segment, Cr)
    v = out_v.reshape(nb, n_segment, Cr)
    att = -jnp.einsum("bic,bjc->bij", q, q)
    att = jax.nn.softmax(att, axis=1)                            # F.softmax(ATT, 1)
    q_upd = jnp.einsum("bij,bjc->bic", att, v) + v               # (nb, T, Cr)
    q_upd = q_upd.reshape(nt, Cr)

    kh, kw = params["wi"].shape[2], params["wi"].shape[3]
    wi = params["wi"][:, :, kh // 2, kw // 2]                    # (C, Cr)
    g = jnp.einsum("nr,or->no", q_upd, wi) + params["bi"][None, :]
    g = (g - params["mi"][None, :]) / jnp.sqrt(params["vi"][None, :] + eps)
    g = g * params["gi"][None, :] + params["beti"][None, :]
    g = jnp.maximum(g, 0.0)
    g = jax.nn.sigmoid(g)                                        # (nt, C)
    return g[:, :, None, None] * x


# --------------------------------- main ------------------------------------- #
def make_params(key, C, Cr, kernel_size=1):
    ks = jax.random.split(key, 16)

    def nrm(k, shape, s=0.1):
        return (s * jax.random.normal(k, shape)).astype(jnp.float32)

    params = dict(
        wq=nrm(ks[0], (Cr, C)), bq=nrm(ks[1], (Cr,)),
        gq=1.0 + nrm(ks[2], (Cr,)), betq=nrm(ks[3], (Cr,)),
        mq=nrm(ks[4], (Cr,)), vq=1.0 + jnp.abs(nrm(ks[5], (Cr,))),
        wk=nrm(ks[6], (Cr, C)), bk=nrm(ks[7], (Cr,)),
        gk=1.0 + nrm(ks[8], (Cr,)), betk=nrm(ks[9], (Cr,)),
        mk=nrm(ks[10], (Cr,)), vk=1.0 + jnp.abs(nrm(ks[11], (Cr,))),
        wi=nrm(ks[12], (C, Cr, kernel_size, kernel_size)), bi=nrm(ks[13], (C,)),
        gi=1.0 + nrm(ks[14], (C,)), beti=nrm(ks[15], (C,)),
        mi=jnp.zeros((C,), jnp.float32), vi=jnp.ones((C,), jnp.float32),
    )
    return params


if __name__ == "__main__":
    n_batch, n_segment = 2, 8
    nt = n_batch * n_segment
    C = 32
    n_div = 8
    Cr = C // n_div
    kernel_size = 1   # conv_inflate config (padding=0)

    key = jax.random.PRNGKey(0)
    kx, kp, kx2 = jax.random.split(key, 3)
    params = make_params(kp, C, Cr, kernel_size)

    # Path 1: fused single-pass (whole clip fits VMEM).
    H, W = 8, 8
    x = jax.random.normal(kx, (nt, C, H, W), dtype=jnp.float32)
    fwd = jax.jit(functools.partial(cme_forward, n_segment=n_segment, n_div=n_div))
    out = jax.block_until_ready(fwd(x, params))
    ref = cme_reference(x, params, n_segment, n_div)
    assert out.shape == (nt, C, H, W) and out.dtype == x.dtype
    assert jnp.allclose(out, ref, rtol=1e-4, atol=1e-4), \
        float(jnp.max(jnp.abs(out - ref)))

    # Path 2: two-pass streaming with partial (lane-masked) HW tiles.
    H2, W2 = 12, 16   # HW=192, not a multiple of 128 -> exercises masking/clipping
    x2 = jax.random.normal(kx2, (nt, C, H2, W2), dtype=jnp.float32)
    fwd2 = jax.jit(functools.partial(cme_forward, n_segment=n_segment, n_div=n_div,
                                     force_two_pass=True,
                                     tile_hw_a=128, tile_hw_b=128))
    out2 = jax.block_until_ready(fwd2(x2, params))
    ref2 = cme_reference(x2, params, n_segment, n_div)
    assert out2.shape == (nt, C, H2, W2) and out2.dtype == x2.dtype
    assert jnp.allclose(out2, ref2, rtol=1e-4, atol=1e-4), \
        float(jnp.max(jnp.abs(out2 - ref2)))

    print("KERNEL_OK")
</pallas_src>

<mosaic_0001>
module attributes {stable_mosaic.version = 11 : i64} {
  func.func @cme_fused_kernel(%arg0: i32, %arg1: memref<1x8x32x64xf32, #tpu.memory_space<vmem>>, %arg2: memref<8x32xf32, #tpu.memory_space<vmem>>, %arg3: memref<8x1xf32, #tpu.memory_space<vmem>>, %arg4: memref<32x4xf32, #tpu.memory_space<vmem>>, %arg5: memref<32x1xf32, #tpu.memory_space<vmem>>, %arg6: memref<1x8x32x64xf32, #tpu.memory_space<vmem>>) attributes {dimension_semantics = [#tpu.dimension_semantics<parallel>], iteration_bounds = array<i64: 2>, scalar_prefetch = 0 : i64, scratch_operands = 0 : i64, tpu.core_type = #tpu.core_type<tc>, window_params = [{transform_indices = @transform_0, window_bounds = array<i64: 1, 8, 32, 64>}, {pipeline_mode = #tpu.pipeline_mode<synchronous>, transform_indices = @transform_1, window_bounds = array<i64: 8, 32>}, {pipeline_mode = #tpu.pipeline_mode<synchronous>, transform_indices = @transform_2, window_bounds = array<i64: 8, 1>}, {pipeline_mode = #tpu.pipeline_mode<synchronous>, transform_indices = @transform_3, window_bounds = array<i64: 32, 4>}, {pipeline_mode = #tpu.pipeline_mode<synchronous>, transform_indices = @transform_4, window_bounds = array<i64: 32, 1>}, {transform_indices = @transform_5, window_bounds = array<i64: 1, 8, 32, 64>}]} {
    %c0 = arith.constant 0 : index
    %c0_0 = arith.constant 0 : index
    %0 = vector.load %arg2[%c0, %c0_0] : memref<8x32xf32, #tpu.memory_space<vmem>>, vector<8x32xf32>
    %c0_1 = arith.constant 0 : index
    %c0_2 = arith.constant 0 : index
    %1 = vector.load %arg3[%c0_1, %c0_2] : memref<8x1xf32, #tpu.memory_space<vmem>>, vector<8x1xf32>
    %c0_3 = arith.constant 0 : index
    %c0_4 = arith.constant 0 : index
    %c0_5 = arith.constant 0 : index
    %c0_6 = arith.constant 0 : index
    %2 = vector.load %arg1[%c0_3, %c0_4, %c0_5, %c0_6] : memref<1x8x32x64xf32, #tpu.memory_space<vmem>>, vector<1x1x32x64xf32>
    %3 = vector.shape_cast %2 : vector<1x1x32x64xf32> to vector<32x64xf32>
    %cst = arith.constant dense<0.000000e+00> : vector<8x64xf32>
    %4 = tpu.matmul %0, %3, %cst {dimension_numbers = #tpu.dot_dimension_numbers<[1], [0], [0], [1], [0, 0, 1, 1], [], []>} : vector<8x32xf32>, vector<32x64xf32>, vector<8x64xf32> -> vector<8x64xf32>
    %5 = vector.broadcast %1 : vector<8x1xf32> to vector<8x64xf32>
    %6 = arith.addf %4, %5 : vector<8x64xf32>
    %cst_7 = arith.constant 0.000000e+00 : f32
    %7 = vector.broadcast %cst_7 : f32 to vector<8x64xf32>
    %8 = arith.maximumf %6, %7 : vector<8x64xf32>
    %cst_8 = arith.constant dense<0.000000e+00> : vector<8xf32>
    %9 = vector.multi_reduction <add>, %8, %cst_8 [1] : vector<8x64xf32> to vector<8xf32>
    %10 = vector.shape_cast %9 : vector<8xf32> to vector<8x1xf32>
    %c0_9 = arith.constant 0 : index
    %c1 = arith.constant 1 : index
    %c0_10 = arith.constant 0 : index
    %c0_11 = arith.constant 0 : index
    %11 = vector.load %arg1[%c0_9, %c1, %c0_10, %c0_11] : memref<1x8x32x64xf32, #tpu.memory_space<vmem>>, vector<1x1x32x64xf32>
    %12 = vector.shape_cast %11 : vector<1x1x32x64xf32> to vector<32x64xf32>
    %cst_12 = arith.constant dense<0.000000e+00> : vector<8x64xf32>
    %13 = tpu.matmul %0, %12, %cst_12 {dimension_numbers = #tpu.dot_dimension_numbers<[1], [0], [0], [1], [0, 0, 1, 1], [], []>} : vector<8x32xf32>, vector<32x64xf32>, vector<8x64xf32> -> vector<8x64xf32>
    %14 = vector.broadcast %1 : vector<8x1xf32> to vector<8x64xf32>
    %15 = arith.addf %13, %14 : vector<8x64xf32>
    %cst_13 = arith.constant 0.000000e+00 : f32
    %16 = vector.broadcast %cst_13 : f32 to vector<8x64xf32>
    %17 = arith.maximumf %15, %16 : vector<8x64xf32>
    %cst_14 = arith.constant dense<0.000000e+00> : vector<8xf32>
    %18 = vector.multi_reduction <add>, %17, %cst_14 [1] : vector<8x64xf32> to vector<8xf32>
    %19 = vector.shape_cast %18 : vector<8xf32> to vector<8x1xf32>
    %c0_15 = arith.constant 0 : index
    %c2 = arith.constant 2 : index
    %c0_16 = arith.constant 0 : index
    %c0_17 = arith.constant 0 : index
    %20 = vector.load %arg1[%c0_15, %c2, %c0_16, %c0_17] : memref<1x8x32x64xf32, #tpu.memory_space<vmem>>, vector<1x1x32x64xf32>
    %21 = vector.shape_cast %20 : vector<1x1x32x64xf32> to vector<32x64xf32>
    %cst_18 = arith.constant dense<0.000000e+00> : vector<8x64xf32>
    %22 = tpu.matmul %0, %21, %cst_18 {dimension_numbers = #tpu.dot_dimension_numbers<[1], [0], [0], [1], [0, 0, 1, 1], [], []>} : vector<8x32xf32>, vector<32x64xf32>, vector<8x64xf32> -> vector<8x64xf32>
    %23 = vector.broadcast %1 : vector<8x1xf32> to vector<8x64xf32>
    %24 = arith.addf %22, %23 : vector<8x64xf32>
    %cst_19 = arith.constant 0.000000e+00 : f32
    %25 = vector.broadcast %cst_19 : f32 to vector<8x64xf32>
    %26 = arith.maximumf %24, %25 : vector<8x64xf32>
    %cst_20 = arith.constant dense<0.000000e+00> : vector<8xf32>
    %27 = vector.multi_reduction <add>, %26, %cst_20 [1] : vector<8x64xf32> to vector<8xf32>
    %28 = vector.shape_cast %27 : vector<8xf32> to vector<8x1xf32>
    %c0_21 = arith.constant 0 : index
    %c3 = arith.constant 3 : index
    %c0_22 = arith.constant 0 : index
    %c0_23 = arith.constant 0 : index
    %29 = vector.load %arg1[%c0_21, %c3, %c0_22, %c0_23] : memref<1x8x32x64xf32, #tpu.memory_space<vmem>>, vector<1x1x32x64xf32>
    %30 = vector.shape_cast %29 : vector<1x1x32x64xf32> to vector<32x64xf32>
    %cst_24 = arith.constant dense<0.000000e+00> : vector<8x64xf32>
    %31 = tpu.matmul %0, %30, %cst_24 {dimension_numbers = #tpu.dot_dimension_numbers<[1], [0], [0], [1], [0, 0, 1, 1], [], []>} : vector<8x32xf32>, vector<32x64xf32>, vector<8x64xf32> -> vector<8x64xf32>
    %32 = vector.broadcast %1 : vector<8x1xf32> to vector<8x64xf32>
    %33 = arith.addf %31, %32 : vector<8x64xf32>
    %cst_25 = arith.constant 0.000000e+00 : f32
    %34 = vector.broadcast %cst_25 : f32 to vector<8x64xf32>
    %35 = arith.maximumf %33, %34 : vector<8x64xf32>
    %cst_26 = arith.constant dense<0.000000e+00> : vector<8xf32>
    %36 = vector.multi_reduction <add>, %35, %cst_26 [1] : vector<8x64xf32> to vector<8xf32>
    %37 = vector.shape_cast %36 : vector<8xf32> to vector<8x1xf32>
    %c0_27 = arith.constant 0 : index
    %c4 = arith.constant 4 : index
    %c0_28 = arith.constant 0 : index
    %c0_29 = arith.constant 0 : index
    %38 = vector.load %arg1[%c0_27, %c4, %c0_28, %c0_29] : memref<1x8x32x64xf32, #tpu.memory_space<vmem>>, vector<1x1x32x64xf32>
    %39 = vector.shape_cast %38 : vector<1x1x32x64xf32> to vector<32x64xf32>
    %cst_30 = arith.constant dense<0.000000e+00> : vector<8x64xf32>
    %40 = tpu.matmul %0, %39, %cst_30 {dimension_numbers = #tpu.dot_dimension_numbers<[1], [0], [0], [1], [0, 0, 1, 1], [], []>} : vector<8x32xf32>, vector<32x64xf32>, vector<8x64xf32> -> vector<8x64xf32>
    %41 = vector.broadcast %1 : vector<8x1xf32> to vector<8x64xf32>
    %42 = arith.addf %40, %41 : vector<8x64xf32>
    %cst_31 = arith.constant 0.000000e+00 : f32
    %43 = vector.broadcast %cst_31 : f32 to vector<8x64xf32>
    %44 = arith.maximumf %42, %43 : vector<8x64xf32>
    %cst_32 = arith.constant dense<0.000000e+00> : vector<8xf32>
    %45 = vector.multi_reduction <add>, %44, %cst_32 [1] : vector<8x64xf32> to vector<8xf32>
    %46 = vector.shape_cast %45 : vector<8xf32> to vector<8x1xf32>
    %c0_33 = arith.constant 0 : index
    %c5 = arith.constant 5 : index
    %c0_34 = arith.constant 0 : index
    %c0_35 = arith.constant 0 : index
    %47 = vector.load %arg1[%c0_33, %c5, %c0_34, %c0_35] : memref<1x8x32x64xf32, #tpu.memory_space<vmem>>, vector<1x1x32x64xf32>
    %48 = vector.shape_cast %47 : vector<1x1x32x64xf32> to vector<32x64xf32>
    %cst_36 = arith.constant dense<0.000000e+00> : vector<8x64xf32>
    %49 = tpu.matmul %0, %48, %cst_36 {dimension_numbers = #tpu.dot_dimension_numbers<[1], [0], [0], [1], [0, 0, 1, 1], [], []>} : vector<8x32xf32>, vector<32x64xf32>, vector<8x64xf32> -> vector<8x64xf32>
    %50 = vector.broadcast %1 : vector<8x1xf32> to vector<8x64xf32>
    %51 = arith.addf %49, %50 : vector<8x64xf32>
    %cst_37 = arith.constant 0.000000e+00 : f32
    %52 = vector.broadcast %cst_37 : f32 to vector<8x64xf32>
    %53 = arith.maximumf %51, %52 : vector<8x64xf32>
    %cst_38 = arith.constant dense<0.000000e+00> : vector<8xf32>
    %54 = vector.multi_reduction <add>, %53, %cst_38 [1] : vector<8x64xf32> to vector<8xf32>
    %55 = vector.shape_cast %54 : vector<8xf32> to vector<8x1xf32>
    %c0_39 = arith.constant 0 : index
    %c6 = arith.constant 6 : index
    %c0_40 = arith.constant 0 : index
    %c0_41 = arith.constant 0 : index
    %56 = vector.load %arg1[%c0_39, %c6, %c0_40, %c0_41] : memref<1x8x32x64xf32, #tpu.memory_space<vmem>>, vector<1x1x32x64xf32>
    %57 = vector.shape_cast %56 : vector<1x1x32x64xf32> to vector<32x64xf32>
    %cst_42 = arith.constant dense<0.000000e+00> : vector<8x64xf32>
    %58 = tpu.matmul %0, %57, %cst_42 {dimension_numbers = #tpu.dot_dimension_numbers<[1], [0], [0], [1], [0, 0, 1, 1], [], []>} : vector<8x32xf32>, vector<32x64xf32>, vector<8x64xf32> -> vector<8x64xf32>
    %59 = vector.broadcast %1 : vector<8x1xf32> to vector<8x64xf32>
    %60 = arith.addf %58, %59 : vector<8x64xf32>
    %cst_43 = arith.constant 0.000000e+00 : f32
    %61 = vector.broadcast %cst_43 : f32 to vector<8x64xf32>
    %62 = arith.maximumf %60, %61 : vector<8x64xf32>
    %cst_44 = arith.constant dense<0.000000e+00> : vector<8xf32>
    %63 = vector.multi_reduction <add>, %62, %cst_44 [1] : vector<8x64xf32> to vector<8xf32>
    %64 = vector.shape_cast %63 : vector<8xf32> to vector<8x1xf32>
    %c0_45 = arith.constant 0 : index
    %c7 = arith.constant 7 : index
    %c0_46 = arith.constant 0 : index
    %c0_47 = arith.constant 0 : index
    %65 = vector.load %arg1[%c0_45, %c7, %c0_46, %c0_47] : memref<1x8x32x64xf32, #tpu.memory_space<vmem>>, vector<1x1x32x64xf32>
    %66 = vector.shape_cast %65 : vector<1x1x32x64xf32> to vector<32x64xf32>
    %cst_48 = arith.constant dense<0.000000e+00> : vector<8x64xf32>
    %67 = tpu.matmul %0, %66, %cst_48 {dimension_numbers = #tpu.dot_dimension_numbers<[1], [0], [0], [1], [0, 0, 1, 1], [], []>} : vector<8x32xf32>, vector<32x64xf32>, vector<8x64xf32> -> vector<8x64xf32>
    %68 = vector.broadcast %1 : vector<8x1xf32> to vector<8x64xf32>
    %69 = arith.addf %67, %68 : vector<8x64xf32>
    %cst_49 = arith.constant 0.000000e+00 : f32
    %70 = vector.broadcast %cst_49 : f32 to vector<8x64xf32>
    %71 = arith.maximumf %69, %70 : vector<8x64xf32>
    %cst_50 = arith.constant dense<0.000000e+00> : vector<8xf32>
    %72 = vector.multi_reduction <add>, %71, %cst_50 [1] : vector<8x64xf32> to vector<8xf32>
    %73 = vector.shape_cast %72 : vector<8xf32> to vector<8x1xf32>
    %74 = tpu.concatenate %10, %19, %28, %37, %46, %55, %64, %73 in 1 : vector<8x1xf32>, vector<8x1xf32>, vector<8x1xf32>, vector<8x1xf32>, vector<8x1xf32>, vector<8x1xf32>, vector<8x1xf32>, vector<8x1xf32> -> vector<8x8xf32>
    %cst_51 = arith.constant 1.562500e-02 : f32
    %75 = vector.broadcast %cst_51 : f32 to vector<8x8xf32>
    %76 = arith.mulf %74, %75 : vector<8x8xf32>
    %c0_52 = arith.constant 0 : index
    %c0_53 = arith.constant 0 : index
    %77 = vector.load %arg4[%c0_52, %c0_53] : memref<32x4xf32, #tpu.memory_space<vmem>>, vector<32x4xf32>
    %c0_54 = arith.constant 0 : index
    %c0_55 = arith.constant 0 : index
    %78 = vector.load %arg5[%c0_54, %c0_55] : memref<32x1xf32, #tpu.memory_space<vmem>>, vector<32x1xf32>
    %79 = tpu.transpose %76, [1, 0] : vector<8x8xf32> -> vector<8x8xf32>
    %80 = vector.extract_strided_slice %79 {offsets = [0, 0], sizes = [8, 4], strides = [1, 1]} : vector<8x8xf32> to vector<8x4xf32>
    %81 = vector.extract_strided_slice %79 {offsets = [0, 4], sizes = [8, 4], strides = [1, 1]} : vector<8x8xf32> to vector<8x4xf32>
    %82 = tpu.transpose %80, [1, 0] : vector<8x4xf32> -> vector<4x8xf32>
    %cst_56 = arith.constant dense<0.000000e+00> : vector<8x8xf32>
    %83 = tpu.matmul %80, %82, %cst_56 {dimension_numbers = #tpu.dot_dimension_numbers<[1], [0], [0], [1], [0, 0, 1, 1], [], []>} : vector<8x4xf32>, vector<4x8xf32>, vector<8x8xf32> -> vector<8x8xf32>
    %cst_57 = arith.constant 0.000000e+00 : f32
    %84 = vector.broadcast %cst_57 : f32 to vector<8x8xf32>
    %85 = arith.subf %84, %83 : vector<8x8xf32>
    %cst_58 = arith.constant dense<0xFF800000> : vector<8xf32>
    %86 = vector.multi_reduction <maximumf>, %85, %cst_58 [0] : vector<8x8xf32> to vector<8xf32>
    %87 = vector.shape_cast %86 : vector<8xf32> to vector<1x8xf32>
    %88 = vector.broadcast %87 : vector<1x8xf32> to vector<8x8xf32>
    %89 = arith.subf %85, %88 : vector<8x8xf32>
    %90 = math.exp %89 : vector<8x8xf32>
    %cst_59 = arith.constant dense<0.000000e+00> : vector<8xf32>
    %91 = vector.multi_reduction <add>, %90, %cst_59 [0] : vector<8x8xf32> to vector<8xf32>
    %92 = vector.shape_cast %91 : vector<8xf32> to vector<1x8xf32>
    %93 = vector.broadcast %92 : vector<1x8xf32> to vector<8x8xf32>
    %94 = arith.divf %90, %93 : vector<8x8xf32>
    %cst_60 = arith.constant dense<0.000000e+00> : vector<8x4xf32>
    %95 = tpu.matmul %94, %81, %cst_60 {dimension_numbers = #tpu.dot_dimension_numbers<[1], [0], [0], [1], [0, 0, 1, 1], [], []>} : vector<8x8xf32>, vector<8x4xf32>, vector<8x4xf32> -> vector<8x4xf32>
    %96 = arith.addf %95, %81 : vector<8x4xf32>
    %97 = tpu.transpose %96, [1, 0] : vector<8x4xf32> -> vector<4x8xf32>
    %cst_61 = arith.constant dense<0.000000e+00> : vector<32x8xf32>
    %98 = tpu.matmul %77, %97, %cst_61 {dimension_numbers = #tpu.dot_dimension_numbers<[1], [0], [0], [1], [0, 0, 1, 1], [], []>} : vector<32x4xf32>, vector<4x8xf32>, vector<32x8xf32> -> vector<32x8xf32>
    %99 = vector.broadcast %78 : vector<32x1xf32> to vector<32x8xf32>
    %100 = arith.addf %98, %99 : vector<32x8xf32>
    %cst_62 = arith.constant 0.000000e+00 : f32
    %101 = vector.broadcast %cst_62 : f32 to vector<32x8xf32>
    %102 = arith.maximumf %100, %101 : vector<32x8xf32>
    %103 = arith.negf %102 : vector<32x8xf32>
    %104 = math.exp %103 : vector<32x8xf32>
    %cst_63 = arith.constant 1.000000e+00 : f32
    %105 = vector.broadcast %cst_63 : f32 to vector<32x8xf32>
    %106 = arith.addf %105, %104 : vector<32x8xf32>
    %107 = arith.divf %105, %106 : vector<32x8xf32>
    %108 = vector.extract_strided_slice %107 {offsets = [0, 0], sizes = [32, 1], strides = [1, 1]} : vector<32x8xf32> to vector<32x1xf32>
    %c0_64 = arith.constant 0 : index
    %c0_65 = arith.constant 0 : index
    %c0_66 = arith.constant 0 : index
    %c0_67 = arith.constant 0 : index
    %109 = vector.load %arg1[%c0_64, %c0_65, %c0_66, %c0_67] : memref<1x8x32x64xf32, #tpu.memory_space<vmem>>, vector<1x1x32x64xf32>
    %110 = vector.shape_cast %109 : vector<1x1x32x64xf32> to vector<32x64xf32>
    %111 = vector.broadcast %108 : vector<32x1xf32> to vector<32x64xf32>
    %112 = arith.mulf %110, %111 : vector<32x64xf32>
    %c0_68 = arith.constant 0 : index
    %c0_69 = arith.constant 0 : index
    %c0_70 = arith.constant 0 : index
    %c0_71 = arith.constant 0 : index
    %113 = vector.load %arg6[%c0_68, %c0_69, %c0_70, %c0_71] : memref<1x8x32x64xf32, #tpu.memory_space<vmem>>, vector<1x1x32x64xf32>
    %114 = vector.shape_cast %113 : vector<1x1x32x64xf32> to vector<32x64xf32>
    %115 = vector.shape_cast %112 : vector<32x64xf32> to vector<1x1x32x64xf32>
    tpu.vector_store %arg6[%c0_68, %c0_69, %c0_70, %c0_71], %115 {strides = array<i32>} : memref<1x8x32x64xf32, #tpu.memory_space<vmem>>, vector<1x1x32x64xf32>,
    %116 = vector.extract_strided_slice %107 {offsets = [0, 1], sizes = [32, 1], strides = [1, 1]} : vector<32x8xf32> to vector<32x1xf32>
    %c0_72 = arith.constant 0 : index
    %c1_73 = arith.constant 1 : index
    %c0_74 = arith.constant 0 : index
    %c0_75 = arith.constant 0 : index
    %117 = vector.load %arg1[%c0_72, %c1_73, %c0_74, %c0_75] : memref<1x8x32x64xf32, #tpu.memory_space<vmem>>, vector<1x1x32x64xf32>
    %118 = vector.shape_cast %117 : vector<1x1x32x64xf32> to vector<32x64xf32>
    %119 = vector.broadcast %116 : vector<32x1xf32> to vector<32x64xf32>
    %120 = arith.mulf %118, %119 : vector<32x64xf32>
    %c0_76 = arith.constant 0 : index
    %c1_77 = arith.constant 1 : index
    %c0_78 = arith.constant 0 : index
    %c0_79 = arith.constant 0 : index
    %121 = vector.load %arg6[%c0_76, %c1_77, %c0_78, %c0_79] : memref<1x8x32x64xf32, #tpu.memory_space<vmem>>, vector<1x1x32x64xf32>
    %122 = vector.shape_cast %121 : vector<1x1x32x64xf32> to vector<32x64xf32>
    %123 = vector.shape_cast %120 : vector<32x64xf32> to vector<1x1x32x64xf32>
    tpu.vector_store %arg6[%c0_76, %c1_77, %c0_78, %c0_79], %123 {strides = array<i32>} : memref<1x8x32x64xf32, #tpu.memory_space<vmem>>, vector<1x1x32x64xf32>,
    %124 = vector.extract_strided_slice %107 {offsets = [0, 2], sizes = [32, 1], strides = [1, 1]} : vector<32x8xf32> to vector<32x1xf32>
    %c0_80 = arith.constant 0 : index
    %c2_81 = arith.constant 2 : index
    %c0_82 = arith.constant 0 : index
    %c0_83 = arith.constant 0 : index
    %125 = vector.load %arg1[%c0_80, %c2_81, %c0_82, %c0_83] : memref<1x8x32x64xf32, #tpu.memory_space<vmem>>, vector<1x1x32x64xf32>
    %126 = vector.shape_cast %125 : vector<1x1x32x64xf32> to vector<32x64xf32>
    %127 = vector.broadcast %124 : vector<32x1xf32> to vector<32x64xf32>
    %128 = arith.mulf %126, %127 : vector<32x64xf32>
    %c0_84 = arith.constant 0 : index
    %c2_85 = arith.constant 2 : index
    %c0_86 = arith.constant 0 : index
    %c0_87 = arith.constant 0 : index
    %129 = vector.load %arg6[%c0_84, %c2_85, %c0_86, %c0_87] : memref<1x8x32x64xf32, #tpu.memory_space<vmem>>, vector<1x1x32x64xf32>
    %130 = vector.shape_cast %129 : vector<1x1x32x64xf32> to vector<32x64xf32>
    %131 = vector.shape_cast %128 : vector<32x64xf32> to vector<1x1x32x64xf32>
    tpu.vector_store %arg6[%c0_84, %c2_85, %c0_86, %c0_87], %131 {strides = array<i32>} : memref<1x8x32x64xf32, #tpu.memory_space<vmem>>, vector<1x1x32x64xf32>,
    %132 = vector.extract_strided_slice %107 {offsets = [0, 3], sizes = [32, 1], strides = [1, 1]} : vector<32x8xf32> to vector<32x1xf32>
    %c0_88 = arith.constant 0 : index
    %c3_89 = arith.constant 3 : index
    %c0_90 = arith.constant 0 : index
    %c0_91 = arith.constant 0 : index
    %133 = vector.load %arg1[%c0_88, %c3_89, %c0_90, %c0_91] : memref<1x8x32x64xf32, #tpu.memory_space<vmem>>, vector<1x1x32x64xf32>
    %134 = vector.shape_cast %133 : vector<1x1x32x64xf32> to vector<32x64xf32>
    %135 = vector.broadcast %132 : vector<32x1xf32> to vector<32x64xf32>
    %136 = arith.mulf %134, %135 : vector<32x64xf32>
    %c0_92 = arith.constant 0 : index
    %c3_93 = arith.constant 3 : index
    %c0_94 = arith.constant 0 : index
    %c0_95 = arith.constant 0 : index
    %137 = vector.load %arg6[%c0_92, %c3_93, %c0_94, %c0_95] : memref<1x8x32x64xf32, #tpu.memory_space<vmem>>, vector<1x1x32x64xf32>
    %138 = vector.shape_cast %137 : vector<1x1x32x64xf32> to vector<32x64xf32>
    %139 = vector.shape_cast %136 : vector<32x64xf32> to vector<1x1x32x64xf32>
    tpu.vector_store %arg6[%c0_92, %c3_93, %c0_94, %c0_95], %139 {strides = array<i32>} : memref<1x8x32x64xf32, #tpu.memory_space<vmem>>, vector<1x1x32x64xf32>,
    %140 = vector.extract_strided_slice %107 {offsets = [0, 4], sizes = [32, 1], strides = [1, 1]} : vector<32x8xf32> to vector<32x1xf32>
    %c0_96 = arith.constant 0 : index
    %c4_97 = arith.constant 4 : index
    %c0_98 = arith.constant 0 : index
    %c0_99 = arith.constant 0 : index
    %141 = vector.load %arg1[%c0_96, %c4_97, %c0_98, %c0_99] : memref<1x8x32x64xf32, #tpu.memory_space<vmem>>, vector<1x1x32x64xf32>
    %142 = vector.shape_cast %141 : vector<1x1x32x64xf32> to vector<32x64xf32>
    %143 = vector.broadcast %140 : vector<32x1xf32> to vector<32x64xf32>
    %144 = arith.mulf %142, %143 : vector<32x64xf32>
    %c0_100 = arith.constant 0 : index
    %c4_101 = arith.constant 4 : index
    %c0_102 = arith.constant 0 : index
    %c0_103 = arith.constant 0 : index
    %145 = vector.load %arg6[%c0_100, %c4_101, %c0_102, %c0_103] : memref<1x8x32x64xf32, #tpu.memory_space<vmem>>, vector<1x1x32x64xf32>
    %146 = vector.shape_cast %145 : vector<1x1x32x64xf32> to vector<32x64xf32>
    %147 = vector.shape_cast %144 : vector<32x64xf32> to vector<1x1x32x64xf32>
    tpu.vector_store %arg6[%c0_100, %c4_101, %c0_102, %c0_103], %147 {strides = array<i32>} : memref<1x8x32x64xf32, #tpu.memory_space<vmem>>, vector<1x1x32x64xf32>,
    %148 = vector.extract_strided_slice %107 {offsets = [0, 5], sizes = [32, 1], strides = [1, 1]} : vector<32x8xf32> to vector<32x1xf32>
    %c0_104 = arith.constant 0 : index
    %c5_105 = arith.constant 5 : index
    %c0_106 = arith.constant 0 : index
    %c0_107 = arith.constant 0 : index
    %149 = vector.load %arg1[%c0_104, %c5_105, %c0_106, %c0_107] : memref<1x8x32x64xf32, #tpu.memory_space<vmem>>, vector<1x1x32x64xf32>
    %150 = vector.shape_cast %149 : vector<1x1x32x64xf32> to vector<32x64xf32>
    %151 = vector.broadcast %148 : vector<32x1xf32> to vector<32x64xf32>
    %152 = arith.mulf %150, %151 : vector<32x64xf32>
    %c0_108 = arith.constant 0 : index
    %c5_109 = arith.constant 5 : index
    %c0_110 = arith.constant 0 : index
    %c0_111 = arith.constant 0 : index
    %153 = vector.load %arg6[%c0_108, %c5_109, %c0_110, %c0_111] : memref<1x8x32x64xf32, #tpu.memory_space<vmem>>, vector<1x1x32x64xf32>
    %154 = vector.shape_cast %153 : vector<1x1x32x64xf32> to vector<32x64xf32>
    %155 = vector.shape_cast %152 : vector<32x64xf32> to vector<1x1x32x64xf32>
    tpu.vector_store %arg6[%c0_108, %c5_109, %c0_110, %c0_111], %155 {strides = array<i32>} : memref<1x8x32x64xf32, #tpu.memory_space<vmem>>, vector<1x1x32x64xf32>,
    %156 = vector.extract_strided_slice %107 {offsets = [0, 6], sizes = [32, 1], strides = [1, 1]} : vector<32x8xf32> to vector<32x1xf32>
    %c0_112 = arith.constant 0 : index
    %c6_113 = arith.constant 6 : index
    %c0_114 = arith.constant 0 : index
    %c0_115 = arith.constant 0 : index
    %157 = vector.load %arg1[%c0_112, %c6_113, %c0_114, %c0_115] : memref<1x8x32x64xf32, #tpu.memory_space<vmem>>, vector<1x1x32x64xf32>
    %158 = vector.shape_cast %157 : vector<1x1x32x64xf32> to vector<32x64xf32>
    %159 = vector.broadcast %156 : vector<32x1xf32> to vector<32x64xf32>
    %160 = arith.mulf %158, %159 : vector<32x64xf32>
    %c0_116 = arith.constant 0 : index
    %c6_117 = arith.constant 6 : index
    %c0_118 = arith.constant 0 : index
    %c0_119 = arith.constant 0 : index
    %161 = vector.load %arg6[%c0_116, %c6_117, %c0_118, %c0_119] : memref<1x8x32x64xf32, #tpu.memory_space<vmem>>, vector<1x1x32x64xf32>
    %162 = vector.shape_cast %161 : vector<1x1x32x64xf32> to vector<32x64xf32>
    %163 = vector.shape_cast %160 : vector<32x64xf32> to vector<1x1x32x64xf32>
    tpu.vector_store %arg6[%c0_116, %c6_117, %c0_118, %c0_119], %163 {strides = array<i32>} : memref<1x8x32x64xf32, #tpu.memory_space<vmem>>, vector<1x1x32x64xf32>,
    %164 = vector.extract_strided_slice %107 {offsets = [0, 7], sizes = [32, 1], strides = [1, 1]} : vector<32x8xf32> to vector<32x1xf32>
    %c0_120 = arith.constant 0 : index
    %c7_121 = arith.constant 7 : index
    %c0_122 = arith.constant 0 : index
    %c0_123 = arith.constant 0 : index
    %165 = vector.load %arg1[%c0_120, %c7_121, %c0_122, %c0_123] : memref<1x8x32x64xf32, #tpu.memory_space<vmem>>, vector<1x1x32x64xf32>
    %166 = vector.shape_cast %165 : vector<1x1x32x64xf32> to vector<32x64xf32>
    %167 = vector.broadcast %164 : vector<32x1xf32> to vector<32x64xf32>
    %168 = arith.mulf %166, %167 : vector<32x64xf32>
    %c0_124 = arith.constant 0 : index
    %c7_125 = arith.constant 7 : index
    %c0_126 = arith.constant 0 : index
    %c0_127 = arith.constant 0 : index
    %169 = vector.load %arg6[%c0_124, %c7_125, %c0_126, %c0_127] : memref<1x8x32x64xf32, #tpu.memory_space<vmem>>, vector<1x1x32x64xf32>
    %170 = vector.shape_cast %169 : vector<1x1x32x64xf32> to vector<32x64xf32>
    %171 = vector.shape_cast %168 : vector<32x64xf32> to vector<1x1x32x64xf32>
    tpu.vector_store %arg6[%c0_124, %c7_125, %c0_126, %c0_127], %171 {strides = array<i32>} : memref<1x8x32x64xf32, #tpu.memory_space<vmem>>, vector<1x1x32x64xf32>,
    return
  }
  func.func @transform_0(%arg0: i32) -> (i32, i32, i32, i32) {
    %c0_i32 = arith.constant 0 : i32
    %c0_i32_0 = arith.constant 0 : i32
    %c0_i32_1 = arith.constant 0 : i32
    %c0_i32_2 = arith.constant 0 : i32
    return %arg0, %c0_i32, %c0_i32_0, %c0_i32_1 : i32, i32, i32, i32
  }
  func.func @transform_1(%arg0: i32) -> (i32, i32) {
    %c0_i32 = arith.constant 0 : i32
    %c0_i32_0 = arith.constant 0 : i32
    %c0_i32_1 = arith.constant 0 : i32
    return %c0_i32, %c0_i32_0 : i32, i32
  }
  func.func @transform_2(%arg0: i32) -> (i32, i32) {
    %c0_i32 = arith.constant 0 : i32
    %c0_i32_0 = arith.constant 0 : i32
    %c0_i32_1 = arith.constant 0 : i32
    return %c0_i32, %c0_i32_0 : i32, i32
  }
  func.func @transform_3(%arg0: i32) -> (i32, i32) {
    %c0_i32 = arith.constant 0 : i32
    %c0_i32_0 = arith.constant 0 : i32
    %c0_i32_1 = arith.constant 0 : i32
    return %c0_i32, %c0_i32_0 : i32, i32
  }
  func.func @transform_4(%arg0: i32) -> (i32, i32) {
    %c0_i32 = arith.constant 0 : i32
    %c0_i32_0 = arith.constant 0 : i32
    %c0_i32_1 = arith.constant 0 : i32
    return %c0_i32, %c0_i32_0 : i32, i32
  }
  func.func @transform_5(%arg0: i32) -> (i32, i32, i32, i32) {
    %c0_i32 = arith.constant 0 : i32
    %c0_i32_0 = arith.constant 0 : i32
    %c0_i32_1 = arith.constant 0 : i32
    %c0_i32_2 = arith.constant 0 : i32
    return %arg0, %c0_i32, %c0_i32_0, %c0_i32_1 : i32, i32, i32, i32
  }
}

</mosaic_0001>

<bundles_post_ra>
// kernel: cme_forward.1
= control target key start
LH: loop header
LB: loop body
LE: loop exit
PB: predicated region body
PF: predicated region fallthrough
CT: control target
= control target key end

     0   :  { %s1267_s18 = smov 0   ;;  %s1625_s0 = inlined_call_operand.vmem [shape: f32[2,8,32,64], index: 0, kind: input, shape index: {}]   ;;  %s1626_s1 = inlined_call_operand.vmem [shape: f32[8,32], index: 1, kind: input, shape index: {}]   ;;  %s1627_s2 = inlined_call_operand.vmem [shape: f32[8,1], index: 2, kind: input, shape index: {}]   ;;  %s1628_s3 = inlined_call_operand.vmem [shape: f32[32,4], index: 3, kind: input, shape index: {}]   ;;  %s1629_s4 = inlined_call_operand.vmem [shape: f32[32,1], index: 4, kind: input, shape index: {}]   ;;  %s1630_s5 = inlined_call_operand.vmem [shape: f32[2,8,32,64], index: 5, kind: output, shape index: {}]  }
   0x1 LB: > { %s1036_s19 = sadd.s32 4294967295, %s1226_s18   ;;  %p1040_p0 = scmp.ge.s32.totalorder %s1226_s18, 1  ;;  %s1226_s18 = sphi %s1267_s18, %s15_s18  }
   0x2   : > { %p187_p1 = scmp.lt.s32.totalorder %s1226_s18, 3 }
   0x4   : > { %p188_p2 = pnand %p1040_p0, %p187_p1 }
   0x5   : > { %p215_p3 = scmp.lt.s32.totalorder (!%p188_p2), %s1036_s19, 1  ;;  %s1229_s30 = smov (!%p188_p2), 124  }
   0x6   : > { %191 = sbr.rel (%p188_p2) target bundleno = 1193 (0x4a9), region = 40 }
   0xb   : > { %v226_v0 = vld [vmem:[%s1627_s2] sm:$0xff]  ;;  %v1228_v1 = vmov 0   ;;  %s1632_s19 = smov (!%p215_p3, %s1036_s19), 1  ;;  %vm236_vm0 = vcmask 261120   ;;  %vm261_vm1 = vcmask 523264   ;;  %vm468_vm2 = vcmask 7168  }
   0xc   : > { %1172 = vset.pattern.permute.xlu0 %v1228_v1  ;;  %1173 = vset.pattern.permute.xlu1 %v1228_v1  ;;  %s1151_s22 = sshll.u32 %s1632_s19, 8  ;;  %v225_v18 = vld [vmem:[%s1626_s1] sm:$0xff]  ;;  %vm470_vm3 = vcmask 15360   ;;  %vm472_vm4 = vcmask 23552   ;;  %vm474_vm5 = vcmask 31744   ;;  %vm476_vm6 = vcmask 39936  }
   0xd   : > { %233 = vperm.xlu0 %1172, %v226_v0   ;;  %s1288_s25 = scalar_lea.vmem %s1625_s0, %s1151_s22  ;;  %v487_v0 = vld [vmem:[%s1629_s4] sm:$0xff]  ;;  %vm478_vm7 = vcmask 48128   ;;  %vm480_vm8 = vcmask 56320   ;;  %vm547_vm9 = vcmask 64512  }
   0xe   : > { %v1291_v2 = vld [vmem:[%s1288_s25 + $0x18] sm:$0xff]  ;;  %v1305_v6 = vld [vmem:[%s1288_s25 + $0x10] sm:$0xff]  ;;  %v1319_v10 = vld [vmem:[%s1288_s25 + $0x8] sm:$0xff] }
   0xf   : > { %v1294_v3 = vld [vmem:[%s1288_s25 + $0x38] sm:$0xff]  ;;  %252 = vmatpush.msra.mxu0 %v1291_v2  ;;  %v1308_v7 = vld [vmem:[%s1288_s25 + $0x30] sm:$0xff]  ;;  %v1324_v11 = vld [vmem:[%s1288_s25 + $0x28] sm:$0xff] }
  0x10   : > { %v1297_v4 = vld [vmem:[%s1288_s25 + $0x58] sm:$0xff]  ;;  %282 = vmatpush.msra.mxu1 %v1294_v3  ;;  %v1313_v8 = vld [vmem:[%s1288_s25 + $0x50] sm:$0xff]  ;;  %v1327_v12 = vld [vmem:[%s1288_s25 + $0x48] sm:$0xff] }
  0x11   : > { %v1302_v5 = vld [vmem:[%s1288_s25 + $0x78] sm:$0xff]  ;;  %311 = vmatpush.msra.mxu2 %v1297_v4  ;;  %v1316_v9 = vld [vmem:[%s1288_s25 + $0x70] sm:$0xff]  ;;  %253 = vmatpush.msra.mxu0 %v1305_v6  ;;  %v1330_v13 = vld [vmem:[%s1288_s25 + $0x68] sm:$0xff] }
  0x12   : > { %340 = vmatpush.msra.mxu3 %v1302_v5  ;;  %283 = vmatpush.msra.mxu1 %v1308_v7  ;;  %v1335_v14 = vld [vmem:[%s1288_s25] sm:$0xff]  ;;  %v1358_v19 = vld [vmem:[%s1288_s25 + $0x98] sm:$0xff]  ;;  %v1374_v23 = vld [vmem:[%s1288_s25 + $0x90] sm:$0xff] }
  0x13   : > { %312 = vmatpush.msra.mxu2 %v1313_v8  ;;  %v1338_v15 = vld [vmem:[%s1288_s25 + $0x20] sm:$0xff]  ;;  %254 = vmatpush.msra.mxu0 %v1319_v10  ;;  %v1361_v20 = vld [vmem:[%s1288_s25 + $0xb8] sm:$0xff]  ;;  %v1377_v24 = vld [vmem:[%s1288_s25 + $0xb0] sm:$0xff] }
  0x14   : > { %341 = vmatpush.msra.mxu3 %v1316_v9  ;;  %284 = vmatpush.msra.mxu1 %v1324_v11  ;;  %v1343_v16 = vld [vmem:[%s1288_s25 + $0x40] sm:$0xff]  ;;  %v1366_v21 = vld [vmem:[%s1288_s25 + $0xd8] sm:$0xff]  ;;  %v1382_v25 = vld [vmem:[%s1288_s25 + $0xd0] sm:$0xff] }
  0x15   : > { %v1346_v17 = vld [vmem:[%s1288_s25 + $0x60] sm:$0xff]  ;;  %313 = vmatpush.msra.mxu2 %v1327_v12  ;;  %255 = vmatpush.msra.mxu0 %v1335_v14  ;;  %v1369_v22 = vld [vmem:[%s1288_s25 + $0xf8] sm:$0xff]  ;;  %v1385_v26 = vld [vmem:[%s1288_s25 + $0xf0] sm:$0xff] }
  0x16   : > { %342 = vmatpush.msra.mxu3 %v1330_v13  ;;  %285 = vmatpush.msra.mxu1 %v1338_v15  ;;  %v1390_v27 = vld [vmem:[%s1288_s25 + $0x88] sm:$0xff]  ;;  %v1406_v31 = vld [vmem:[%s1288_s25 + $0x80] sm:$0xff] }
  0x17   : > { %314 = vmatpush.msra.mxu2 %v1343_v16  ;;  %1045 = vmatmul.msk.f32.vlgmr.msra.gmra.mxu0 %vm236_vm0, %v225_v18  ;;  %v1393_v28 = vld [vmem:[%s1288_s25 + $0xa8] sm:$0xff]  ;;  %v1409_v32 = vld [vmem:[%s1288_s25 + $0xa0] sm:$0xff] }
  0x18   : > { %343 = vmatpush.msra.mxu3 %v1346_v17  ;;  %1050 = vmatmul.msk.f32.vlgmr.msra.gmra.mxu1 %vm236_vm0, %v225_v18  ;;  %v1398_v29 = vld [vmem:[%s1288_s25 + $0xc8] sm:$0xff]  ;;  %v1414_v33 = vld [vmem:[%s1288_s25 + $0xc0] sm:$0xff] }
  0x19   : > { %1055 = vmatmul.msk.f32.vlgmr.msra.gmra.mxu2 %vm236_vm0, %v225_v18  ;;  %1060 = vmatmul.msk.f32.vlgmr.msra.gmra.mxu3 %vm236_vm0, %v225_v18  ;;  %v1401_v30 = vld [vmem:[%s1288_s25 + $0xe8] sm:$0xff]  ;;  %v1417_v34 = vld [vmem:[%s1288_s25 + $0xe0] sm:$0xff]  ;;  %s1517_s25 = scalar_lea.vmem %s1630_s5, %s1151_s22 }
  0x1a   : > { %369 = vmatpush.msrb.mxu0 %v1358_v19  ;;  %398 = vmatpush.msrb.mxu1 %v1361_v20 }
  0x1b   : > { %427 = vmatpush.msrb.mxu2 %v1366_v21  ;;  %456 = vmatpush.msrb.mxu3 %v1369_v22 }
  0x1c   : > { %370 = vmatpush.msrb.mxu0 %v1374_v23  ;;  %399 = vmatpush.msrb.mxu1 %v1377_v24 }
  0x1d   : > { %428 = vmatpush.msrb.mxu2 %v1382_v25  ;;  %457 = vmatpush.msrb.mxu3 %v1385_v26 }
  0x1e   : > { %371 = vmatpush.msrb.mxu0 %v1390_v27  ;;  %400 = vmatpush.msrb.mxu1 %v1393_v28 }
  0x1f   : > { %429 = vmatpush.msrb.mxu2 %v1398_v29  ;;  %458 = vmatpush.msrb.mxu3 %v1401_v30 }
  0x20   : > { %372 = vmatpush.msrb.mxu0 %v1406_v31  ;;  %401 = vmatpush.msrb.mxu1 %v1409_v32 }
  0x21   : > { %430 = vmatpush.msrb.mxu2 %v1414_v33  ;;  %459 = vmatpush.msrb.mxu3 %v1417_v34 }
  0x22   : > { %1065 = vmatmul.msk.f32.vlgmr.msrb.gmra.mxu0 %vm236_vm0, %v225_v18  ;;  %1070 = vmatmul.msk.f32.vlgmr.msrb.gmra.mxu1 %vm236_vm0, %v225_v18 }
  0x23   : > { %1075 = vmatmul.msk.f32.vlgmr.msrb.gmra.mxu2 %vm236_vm0, %v225_v18  ;;  %1080 = vmatmul.msk.f32.vlgmr.msrb.gmra.mxu3 %vm236_vm0, %v225_v18 }
  0x7f   : > { %v234_v35 = vpop.permute.xlu0 %233 }
  0x94   : > { %v257_v36 = vpop.f32.mrf.mxu0 }
  0x95   : > { %v287_v37 = vpop.f32.mrf.mxu1  ;;  %v258_v38 = vadd.f32 %v257_v36, %v234_v35 }
  0x96   : > { %v288_v39 = vadd.f32 %v287_v37, %v234_v35 }
  0x97   : > { %v260_v40 = vmax.f32 %v258_v38, 0.0 }
  0x98   : > { %v290_v41 = vmax.f32 %v288_v39, 0.0 }
  0x99   : > { %v262_v43 = vsel %vm261_vm1, %v260_v40, 0.0 }
  0x9a   : > { %v291_v42 = vsel %vm261_vm1, %v290_v41, 0.0  ;;  %263 = vadd.xlane.f32.xlu0 %v262_v43 }
  0x9b   : > { %292 = vadd.xlane.f32.xlu1 %v291_v42 }
  0x9c   : > { %v316_v44 = vpop.f32.mrf.mxu2  ;;  %v345_v45 = vpop.f32.mrf.mxu3 }
  0x9d   : > { %v317_v46 = vadd.f32 %v316_v44, %v234_v35  ;;  %v346_v47 = vadd.f32 %v345_v45, %v234_v35 }
  0x9f   : > { %v319_v48 = vmax.f32 %v317_v46, 0.0  ;;  %v348_v49 = vmax.f32 %v346_v47, 0.0  ;;  %v374_v50 = vpop.f32.mrf.mxu0  ;;  %v403_v51 = vpop.f32.mrf.mxu1 }
  0xa0   : > { %v375_v52 = vadd.f32 %v374_v50, %v234_v35  ;;  %v404_v54 = vadd.f32 %v403_v51, %v234_v35 }
  0xa1   : > { %v349_v53 = vsel %vm261_vm1, %v348_v49, 0.0  ;;  %v320_v55 = vsel %vm261_vm1, %v319_v48, 0.0 }
  0xa2   : > { %350 = vadd.xlane.f32.xlu2 %v349_v53  ;;  %v377_v56 = vmax.f32 %v375_v52, 0.0  ;;  %v406_v57 = vmax.f32 %v404_v54, 0.0 }
  0xa3   : > { %321 = vadd.xlane.f32.xlu1 %v320_v55 }
  0xa4   : > { %v378_v61 = vsel %vm261_vm1, %v377_v56, 0.0  ;;  %v407_v63 = vsel %vm261_vm1, %v406_v57, 0.0 }
  0xa6   : > { %v432_v58 = vpop.f32.mrf.mxu2  ;;  %v461_v59 = vpop.f32.mrf.mxu3 }
  0xa7   : > { %v433_v60 = vadd.f32 %v432_v58, %v234_v35  ;;  %v462_v62 = vadd.f32 %v461_v59, %v234_v35 }
  0xa9   : > { %v435_v18 = vmax.f32 %v433_v60, 0.0  ;;  %v464_v36 = vmax.f32 %v462_v62, 0.0 }
  0xaa   : > { %379 = vadd.xlane.f32.xlu2 %v378_v61 }
  0xab   : > { %408 = vadd.xlane.f32.xlu1 %v407_v63  ;;  %v436_v37 = vsel %vm261_vm1, %v435_v18, 0.0  ;;  %v465_v38 = vsel %vm261_vm1, %v464_v36, 0.0 }
  0xae   : > { %608 = vperm.xlu0 %1172, %v487_v0  }
  0xb2   : > { %437 = vadd.xlane.f32.xlu2 %v436_v37 }
  0xb3   : > { %466 = vadd.xlane.f32.xlu1 %v465_v38 }
 0x10d   : > { %v264_v41 = vpop.xlane.xlu0 %263 }
 0x10e   : > { %v293_v39 = vpop.xlane.xlu1 %292 }
 0x10f   : > { %v469_v42 = vsel %vm468_vm2, %v264_v41, %v293_v39 }
 0x115   : > { %v351_v40 = vpop.xlane.xlu2 %350 }
 0x116   : > { %v322_v35 = vpop.xlane.xlu1 %321 }
 0x117   : > { %v471_v44 = vsel %vm470_vm3, %v469_v42, %v322_v35 }
 0x118   : > { %v473_v46 = vsel %vm472_vm4, %v471_v44, %v351_v40 }
 0x11d   : > { %v380_v43 = vpop.xlane.xlu2 %379 }
 0x11e   : > { %v409_v45 = vpop.xlane.xlu1 %408  ;;  %v475_v47 = vsel %vm474_vm5, %v473_v46, %v380_v43 }
 0x11f   : > { %v477_v48 = vsel %vm476_vm6, %v475_v47, %v409_v45 }
 0x125   : > { %v438_v49 = vpop.xlane.xlu2 %437 }
 0x126   : > { %v479_v50 = vsel %vm478_vm7, %v477_v48, %v438_v49  ;;  %v467_v51 = vpop.xlane.xlu1 %466 }
 0x127   : > { %v481_v52 = vsel %vm480_vm8, %v479_v50, %v467_v51 }
 0x128   : > { %v482_v53 = vmul.f32 0.015625, %v481_v52 }
 0x12a   : > { %491 = vxpose.xlu2.b32.start.end [1/1] (short) (narrow) %v482_v53, 8 }
 0x18c   : > { %1174 = vset.pattern.permute.xlu2 %v1228_v1 }
 0x1c3   : > { %v507_v54 = vpop.trf.xlu2 }
 0x1c4   : > { %1081 = vmatpush.xpose.msk.msra.mxu0 %vm474_vm5, %v507_v54  ;;  %580 = vrot.lane.b32.xlu1 %v507_v54, %s1229_s30 }
 0x1c7   : > { %1082 = vmatmul.msk.f32.vlgmr.msra.gmra.mxu0 %vm474_vm5, %v507_v54 }
 0x236   : > { %v581_v55 = vpop.permute.xlu1 %580 }
 0x237   : > { %601 = vmatpush.msra.mxu1 %v581_v55 }
 0x244   : > { %v543_v56 = vpop.f32.mrf.mxu0 }
 0x245   : > { %v546_v57 = vsub.f32 0.0, %v543_v56  ;;  %v488_v56 = vld [vmem:[%s1629_s4 + $0x8] sm:$0xff] }
 0x246   : > { %613 = vperm.xlu1 %1173, %v488_v56  }
 0x247   : > { %v548_v58 = vsel %vm547_vm9, %v546_v57, -inf }
 0x248   : > { %v549_v59 = vrot.slane %v548_v58, 4 }
 0x24a   : > { %v550_v60 = vmax.f32 %v548_v58, %v549_v59  ;;  %v490_v58 = vld [vmem:[%s1629_s4 + $0x18] sm:$0xff] }
 0x24b   : > { %623 = vperm.xlu2 %1174, %v490_v58  }
 0x24c   : > { %v551_v61 = vrot.slane %v550_v60, 2 }
 0x24e   : > { %v552_v62 = vmax.f32 %v550_v60, %v551_v61  ;;  %v483_v61 = vld [vmem:[%s1628_s3] sm:$0xff] }
 0x250   : > { %v553_v63 = vrot.slane %v552_v62, 1 }
 0x252   : > { %v554_v0 = vmax.f32 %v552_v62, %v553_v63  ;;  %v485_v62 = vld [vmem:[%s1628_s3 + $0x10] sm:$0xff]  ;;  %v486_v63 = vld [vmem:[%s1628_s3 + $0x18] sm:$0xff] }
 0x254   : > { %v555_v18 = vsub.f32 %v546_v57, %v554_v0  ;;  %v489_v57 = vld [vmem:[%s1629_s4 + $0x10] sm:$0xff] }
 0x255   : > { %618 = vperm.xlu1 %1173, %v489_v57  }
 0x256   : > { %v556_v36 = vmul.f32 1.442695, %v555_v18  ;;  %v609_v18 = vpop.permute.xlu0 %608 }
 0x258   : > { %1200 = vpow2.f32 %v556_v36 }
 0x25e   : > { %v1201_v37 = vpop.eup %1200 }
 0x25f   : > { %v558_v38 = vsel %vm547_vm9, %v1201_v37, 0.0 }
 0x260   : > { %v559_v39 = vrot.slane %v558_v38, 4 }
 0x262   : > { %v560_v40 = vadd.f32 %v559_v39, %v558_v38 }
 0x264   : > { %v561_v35 = vrot.slane %v560_v40, 2 }
 0x266   : > { %v562_v41 = vadd.f32 %v561_v35, %v560_v40 }
 0x268   : > { %v563_v42 = vrot.slane %v562_v41, 1 }
 0x26a   : > { %v564_v43 = vadd.f32 %v563_v42, %v562_v41  ;;  %v1230_v42 = vmov 5  }
 0x26b   : > { %1182 = vset.pattern.permute.xlu2 %v1230_v42 }
 0x26c   : > { %1202 = vrcp.f32 %v564_v43  ;;  %v576_v47 = vand.u32 2147483648, %v564_v43  ;;  %v574_v49 = vand.u32 2147483647, %v564_v43  ;;  %vm570_vm11 = vweird.f32 %v564_v43 }
 0x26e   : > { %v577_v51 = vor.u32 1.1754944e-38, %v576_v47  ;;  %vm575_vm13 = vcmp.eq.f32.partialorder %v574_v49, 8.507059e+37 }
 0x272   : > { %v1203_v44 = vpop.eup %1202 }
 0x273   : > { %v566_v45 = vmul.f32 %v1203_v44, %v564_v43  ;;  %vm571_vm10 = vweird.f32 %v1203_v44  ;;  %v1231_v43 = vmov 1  }
 0x274   : > { %vm572_vm12 = vmor %vm570_vm11, %vm571_vm10  ;;  %1176 = vset.pattern.permute.xlu1 %v1231_v43 }
 0x275   : > { %v567_v46 = vsub.f32 1.0, %v566_v45 }
 0x277   : > { %v568_v48 = vmul.f32 %v1203_v44, %v567_v46 }
 0x279   : > { %v569_v50 = vadd.f32 %v1203_v44, %v568_v48 }
 0x27b   : > { %v573_v52 = vsel %vm572_vm12, %v1203_v44, %v569_v50 }
 0x27c   : > { %v578_v53 = vsel %vm575_vm13, %v577_v51, %v573_v52 }
 0x27d   : > { %v579_v54 = vmul.f32 %v1201_v37, %v578_v53 }
 0x27f   : > { %1083 = vmatmul.msk.f32.vlgmr.msra.gmra.mxu1 %vm547_vm9, %v579_v54 }
 0x2a5   : > { %v624_v46 = vpop.permute.xlu2 %623 }
 0x2b8   : > { %v614_v0 = vpop.permute.xlu1 %613 }
 0x2c7   : > { %v619_v36 = vpop.permute.xlu1 %618 }
 0x2fc   : > { %v603_v59 = vpop.f32.mrf.mxu1 }
 0x2fd   : > { %v604_v60 = vadd.f32 %v603_v59, %v581_v55  ;;  %v484_v55 = vld [vmem:[%s1628_s3 + $0x8] sm:$0xff] }
 0x2ff   : > { %1084 = vmatpush.xpose.msk.msra.mxu2 %vm474_vm5, %v604_v60  ;;  %1153 = vmatpush.xpose.msk.msra.mxu3 %vm474_vm5, %v604_v60 }
 0x302   : > { %1085 = vmatmul.msk.f32.vlgmr.msra.gmra.mxu2 %vm474_vm5, %v483_v61  ;;  %1087 = vmatmul.msk.f32.vlgmr.msra.gmra.mxu3 %vm474_vm5, %v485_v62 }
 0x30a   : > { %1086 = vmatmul.msk.f32.gmra.mxu2 %vm474_vm5, %v484_v55  ;;  %1088 = vmatmul.msk.f32.gmra.mxu3 %vm474_vm5, %v486_v63 }
 0x385   : > { %v658_v37 = vpop.f32.mrf.mxu2  ;;  %v664_v38 = vpop.f32.mrf.mxu3 }
 0x386   : > { %v659_v39 = vadd.f32 %v658_v37, %v609_v18  ;;  %v665_v40 = vadd.f32 %v664_v38, %v619_v36 }
 0x388   : > { %v670_v35 = vmax.f32 %v659_v39, 0.0  ;;  %v672_v41 = vmax.f32 %v665_v40, 0.0 }
 0x38a   : > { %v1089_v44 = vmul.f32 -1.442695, %v670_v35  ;;  %v1091_v45 = vmul.f32 -1.442695, %v672_v41 }
 0x38c   : > { %1204 = vpow2.f32 %v1089_v44 }
 0x38d   : > { %1206 = vpow2.f32 %v1091_v45  ;;  %v661_v47 = vpop.f32.mrf.mxu2  ;;  %v667_v48 = vpop.f32.mrf.mxu3 }
 0x38e   : > { %v662_v49 = vadd.f32 %v661_v47, %v614_v0  ;;  %v668_v50 = vadd.f32 %v667_v48, %v624_v46 }
 0x390   : > { %v671_v51 = vmax.f32 %v662_v49, 0.0  ;;  %v673_v52 = vmax.f32 %v668_v50, 0.0 }
 0x392   : > { %v1205_v53 = vpop.eup %1204  ;;  %v1090_v54 = vmul.f32 -1.442695, %v671_v51  ;;  %v1092_v58 = vmul.f32 -1.442695, %v673_v52 }
 0x393   : > { %v1207_v56 = vpop.eup %1206  ;;  %v686_v57 = vadd.f32 1.0, %v1205_v53 }
 0x394   : > { %v688_v59 = vadd.f32 1.0, %v1207_v56  ;;  %1208 = vpow2.f32 %v1090_v54 }
 0x395   : > { %1210 = vrcp.f32 %v686_v57  ;;  %v699_v37 = vand.u32 2147483647, %v686_v57  ;;  %v701_v38 = vand.u32 2147483648, %v686_v57  ;;  %vm695_vm0 = vweird.f32 %v686_v57 }
 0x396   : > { %1212 = vrcp.f32 %v688_v59  ;;  %v731_v40 = vand.u32 2147483648, %v688_v59  ;;  %v729_v45 = vand.u32 2147483647, %v688_v59  ;;  %vm725_vm3 = vweird.f32 %v688_v59 }
 0x397   : > { %1214 = vpow2.f32 %v1092_v58  ;;  %v702_v47 = vor.u32 1.1754944e-38, %v701_v38  ;;  %vm700_vm4 = vcmp.eq.f32.partialorder %v699_v37, 8.507059e+37 }
 0x398   : > { %v732_v49 = vor.u32 1.1754944e-38, %v731_v40  ;;  %vm730_vm6 = vcmp.eq.f32.partialorder %v729_v45, 8.507059e+37 }
 0x39a   : > { %v1209_v60 = vpop.eup %1208 }
 0x39b   : > { %v1211_v61 = vpop.eup %1210  ;;  %v687_v41 = vadd.f32 1.0, %v1209_v60 }
 0x39c   : > { %v1213_v62 = vpop.eup %1212  ;;  %v691_v55 = vmul.f32 %v1211_v61, %v686_v57  ;;  %vm696_vm14 = vweird.f32 %v1211_v61 }
 0x39d   : > { %v1215_v63 = vpop.eup %1214  ;;  %v721_v18 = vmul.f32 %v1213_v62, %v688_v59  ;;  %vm726_vm15 = vweird.f32 %v1213_v62  ;;  %vm697_vm2 = vmor %vm695_vm0, %vm696_vm14  ;;  %vm710_vm12 = vweird.f32 %v687_v41 }
 0x39e   : > { %v692_v0 = vsub.f32 1.0, %v691_v55  ;;  %v689_v36 = vadd.f32 1.0, %v1215_v63  ;;  %vm727_vm5 = vmor %vm725_vm3, %vm726_vm15  ;;  %v1232_v63 = vmov 6  }
 0x39f   : > { %v722_v39 = vsub.f32 1.0, %v721_v18  ;;  %v1233_v18 = vmov 2  }
 0x3a0   : > { %v693_v35 = vmul.f32 %v1211_v61, %v692_v0  ;;  %1216 = vrcp.f32 %v689_v36  ;;  %vm740_vm7 = vweird.f32 %v689_v36  ;;  %v744_v55 = vand.u32 2147483647, %v689_v36 }
 0x3a1   : > { %v723_v44 = vmul.f32 %v1213_v62, %v722_v39  ;;  %1218 = vrcp.f32 %v687_v41 }
 0x3a2   : > { %v694_v46 = vadd.f32 %v1211_v61, %v693_v35  ;;  %vm745_vm10 = vcmp.eq.f32.partialorder %v744_v55, 8.507059e+37  ;;  %v716_v35 = vand.u32 2147483648, %v687_v41 }
 0x3a3   : > { %v724_v48 = vadd.f32 %v1213_v62, %v723_v44  ;;  %v714_v44 = vand.u32 2147483647, %v687_v41 }
 0x3a4   : > { %v698_v50 = vsel %vm697_vm2, %v1211_v61, %v694_v46  ;;  %v746_v61 = vand.u32 2147483648, %v689_v36  ;;  %v717_v46 = vor.u32 1.1754944e-38, %v716_v35 }
 0x3a5   : > { %v728_v51 = vsel %vm727_vm5, %v1213_v62, %v724_v48  ;;  %v1476_v52 = vsel %vm700_vm4, %v702_v47, %v698_v50  ;;  %vm715_vm14 = vcmp.eq.f32.partialorder %v714_v44, 8.507059e+37  ;;  %v1234_v47 = vmov 3  }
 0x3a6   : > { %v1217_v53 = vpop.eup %1216  ;;  %v1478_v54 = vsel %vm730_vm6, %v732_v49, %v728_v51  ;;  %752 = vperm.xlu0 %1172, %v1476_v52   ;;  %v747_v37 = vor.u32 1.1754944e-38, %v746_v61  ;;  %v1235_v48 = vmov 7   ;;  %v1236_v50 = vmov 4  }
 0x3a7   : > { %v736_v56 = vmul.f32 %v1217_v53, %v689_v36  ;;  %907 = vperm.xlu2 %1182, %v1478_v54   ;;  %791 = vperm.xlu1 %1176, %v1478_v54   ;;  %v1219_v58 = vpop.eup %1218  ;;  %vm741_vm8 = vweird.f32 %v1217_v53 }
 0x3a8   : > { %v706_v60 = vmul.f32 %v1219_v58, %v687_v41  ;;  %vm742_vm9 = vmor %vm740_vm7, %vm741_vm8  ;;  %vm711_vm11 = vweird.f32 %v1219_v58 }
 0x3a9   : > { %v737_v57 = vsub.f32 1.0, %v736_v56  ;;  %vm712_vm13 = vmor %vm710_vm12, %vm711_vm11 }
 0x3aa   : > { %v707_v0 = vsub.f32 1.0, %v706_v60 }
 0x3ab   : > { %v738_v59 = vmul.f32 %v1217_v53, %v737_v57 }
 0x3ac   : > { %v708_v39 = vmul.f32 %v1219_v58, %v707_v0 }
 0x3ad   : > { %v739_v62 = vadd.f32 %v1217_v53, %v738_v59 }
 0x3ae   : > { %762 = vperm.xlu0 %1172, %v1478_v54   ;;  %v709_v36 = vadd.f32 %v1219_v58, %v708_v39 }
 0x3af   : > { %1183 = vset.pattern.permute.xlu2 %v1232_v63  ;;  %1177 = vset.pattern.permute.xlu1 %v1233_v18  ;;  %v743_v38 = vsel %vm742_vm9, %v1217_v53, %v739_v62 }
 0x3b0   : > { %928 = vperm.xlu2 %1183, %v1476_v52   ;;  %812 = vperm.xlu1 %1177, %v1476_v52   ;;  %v1487_v40 = vsel %vm745_vm10, %v747_v37, %v743_v38  ;;  %v713_v45 = vsel %vm712_vm13, %v1219_v58, %v709_v36 }
 0x3b1   : > { %v718_v49 = vsel %vm715_vm14, %v717_v46, %v713_v45 }
 0x3b6   : > { %1175 = vset.pattern.permute.xlu0 %v1231_v43 }
 0x3b7   : > { %783 = vperm.xlu0 %1175, %v1476_v52  }
 0x3b8   : > { %940 = vperm.xlu2 %1183, %v1487_v40   ;;  %820 = vperm.xlu1 %1177, %v1478_v54  }
 0x3bf   : > { %1178 = vset.pattern.permute.xlu0 %v1234_v47 }
 0x3c0   : > { %1197 = vset.pattern.permute.xlu2 %v1235_v48  ;;  %1179 = vset.pattern.permute.xlu1 %v1234_v47 }
 0x3c1   : > { %961 = vperm.xlu2 %1197, %v718_v49   ;;  %849 = vperm.xlu1 %1179, %v1478_v54  }
 0x3c2   : > { %841 = vperm.xlu0 %1178, %v1476_v52  }
 0x3c9   : > { %1180 = vset.pattern.permute.xlu1 %v1236_v50 }
 0x3ca   : > { %1181 = vset.pattern.permute.xlu0 %v1230_v42  ;;  %870 = vperm.xlu1 %1180, %v1476_v52  }
 0x3cb   : > { %899 = vperm.xlu0 %1181, %v1476_v52  }
 0x3d2   : > { %878 = vperm.xlu1 %1180, %v1478_v54  }
 0x3d3   : > { %1188 = vset.pattern.permute.xlu0 %v1231_v43 }
 0x3d4   : > { %795 = vperm.xlu0 %1188, %v1487_v40  }
 0x3da   : > { %1184 = vset.pattern.permute.xlu1 %v1232_v63 }
 0x3db   : > { %936 = vperm.xlu1 %1184, %v1478_v54  }
 0x3dc   : > { %1189 = vset.pattern.permute.xlu0 %v1233_v18 }
 0x3dd   : > { %816 = vperm.xlu0 %1189, %v718_v49  }
 0x3e3   : > { %1185 = vset.pattern.permute.xlu1 %v1235_v48 }
 0x3e4   : > { %957 = vperm.xlu1 %1185, %v1476_v52  }
 0x3e5   : > { %1192 = vset.pattern.permute.xlu0 %v1234_v47 }
 0x3e6   : > { %853 = vperm.xlu0 %1192, %v1487_v40  }
 0x3ec   : > { %1186 = vset.pattern.permute.xlu1 %v1228_v1 }
 0x3ed   : > { %757 = vperm.xlu1 %1186, %v718_v49  }
 0x3ee   : > { %1193 = vset.pattern.permute.xlu0 %v1236_v50 }
 0x3ef   : > { %874 = vperm.xlu0 %1193, %v718_v49  }
 0x3f5   : > { %767 = vperm.xlu1 %1186, %v1487_v40  }
 0x3f7   : > { %1196 = vset.pattern.permute.xlu0 %v1232_v63 }
 0x3f8   : > { %932 = vperm.xlu0 %1196, %v718_v49  }
 0x3fd   : > { %1187 = vset.pattern.permute.xlu1 %v1231_v43 }
 0x3fe   : > { %787 = vperm.xlu1 %1187, %v718_v49  }
 0x400   : > { %1198 = vset.pattern.permute.xlu0 %v1235_v48 }
 0x401   : > { %965 = vperm.xlu0 %1198, %v1478_v54   ;;  %v908_v1 = vpop.permute.xlu2 %907 }
 0x402   : > { %v916_v41 = vmul.f32 %v1377_v24, %v908_v1 }
 0x404   : > { %1131 = vst.msk [vmem:[%s1517_s25 + $0xb0] sm:$0xff] %vm261_vm1, %v916_v41 }
 0x406   : > { %1190 = vset.pattern.permute.xlu1 %v1233_v18 }
 0x407   : > { %824 = vperm.xlu1 %1190, %v1487_v40  }
 0x40a   : > { %v929_v43 = vpop.permute.xlu2 %928 }
 0x40b   : > { %v943_v51 = vmul.f32 %v1414_v33, %v929_v43 }
 0x40d   : > { %1137 = vst.msk [vmem:[%s1517_s25 + $0xc0] sm:$0xff] %vm261_vm1, %v943_v51 }
 0x40f   : > { %1191 = vset.pattern.permute.xlu1 %v1234_v47 }
 0x410   : > { %845 = vperm.xlu1 %1191, %v718_v49  }
 0x412   : > { %v941_v52 = vpop.permute.xlu2 %940 }
 0x413   : > { %v946_v53 = vmul.f32 %v1366_v21, %v941_v52 }
 0x415   : > { %1140 = vst.msk [vmem:[%s1517_s25 + $0xd8] sm:$0xff] %vm261_vm1, %v946_v53 }
 0x418   : > { %1194 = vset.pattern.permute.xlu1 %v1236_v50  ;;  %v753_v24 = vpop.permute.xlu0 %752 }
 0x419   : > { %v792_v54 = vpop.permute.xlu1 %791  ;;  %882 = vperm.xlu1 %1194, %v1487_v40   ;;  %v770_v56 = vmul.f32 %v753_v24, %v1335_v14 }
 0x41a   : > { %v800_v33 = vmul.f32 %v1308_v7, %v792_v54 }
 0x41b   : > { %774 = vst.msk [vmem:[%s1517_s25] sm:$0xff] %vm261_vm1, %v770_v56  ;;  %v962_v57 = vpop.permute.xlu2 %961 }
 0x41c   : > { %1099 = vst.msk [vmem:[%s1517_s25 + $0x30] sm:$0xff] %vm261_vm1, %v800_v33  ;;  %v973_v21 = vmul.f32 %v1401_v30, %v962_v57 }
 0x41e   : > { %1146 = vst.msk [vmem:[%s1517_s25 + $0xe8] sm:$0xff] %vm261_vm1, %v973_v21 }
 0x420   : > { %v763_v58 = vpop.permute.xlu0 %762 }
 0x421   : > { %1195 = vset.pattern.permute.xlu1 %v1230_v42  ;;  %v772_v59 = vmul.f32 %v763_v58, %v1305_v6 }
 0x422   : > { %903 = vperm.xlu1 %1195, %v718_v49   ;;  %v813_v14 = vpop.permute.xlu1 %812 }
 0x423   : > { %776 = vst.msk [vmem:[%s1517_s25 + $0x10] sm:$0xff] %vm261_vm1, %v772_v59  ;;  %v827_v7 = vmul.f32 %v1343_v16, %v813_v14 }
 0x425   : > { %1105 = vst.msk [vmem:[%s1517_s25 + $0x40] sm:$0xff] %vm261_vm1, %v827_v7 }
 0x429   : > { %v784_v60 = vpop.permute.xlu0 %783 }
 0x42a   : > { %911 = vperm.xlu1 %1195, %v1487_v40   ;;  %v821_v30 = vpop.permute.xlu1 %820  ;;  %v798_v61 = vmul.f32 %v1338_v15, %v784_v60 }
 0x42b   : > { %v829_v42 = vmul.f32 %v1313_v8, %v821_v30 }
 0x42c   : > { %1097 = vst.msk [vmem:[%s1517_s25 + $0x20] sm:$0xff] %vm261_vm1, %v798_v61 }
 0x42d   : > { %1107 = vst.msk [vmem:[%s1517_s25 + $0x50] sm:$0xff] %vm261_vm1, %v829_v42 }
 0x432   : > { %1199 = vset.pattern.permute.xlu1 %v1235_v48 }
 0x433   : > { %969 = vperm.xlu1 %1199, %v1487_v40   ;;  %v850_v6 = vpop.permute.xlu1 %849 }
 0x434   : > { %v858_v16 = vmul.f32 %v1316_v9, %v850_v6  ;;  %v842_v62 = vpop.permute.xlu0 %841 }
 0x435   : > { %v856_v15 = vmul.f32 %v1346_v17, %v842_v62 }
 0x436   : > { %1115 = vst.msk [vmem:[%s1517_s25 + $0x70] sm:$0xff] %vm261_vm1, %v858_v16 }
 0x437   : > { %1113 = vst.msk [vmem:[%s1517_s25 + $0x60] sm:$0xff] %vm261_vm1, %v856_v15 }
 0x43c   : > { %v871_v8 = vpop.permute.xlu1 %870 }
 0x43d   : > { %v885_v55 = vmul.f32 %v1406_v31, %v871_v8  ;;  %v900_v63 = vpop.permute.xlu0 %899 }
 0x43e   : > { %v914_v18 = vmul.f32 %v1409_v32, %v900_v63 }
 0x43f   : > { %1121 = vst.msk [vmem:[%s1517_s25 + $0x80] sm:$0xff] %vm261_vm1, %v885_v55 }
 0x440   : > { %1129 = vst.msk [vmem:[%s1517_s25 + $0xa0] sm:$0xff] %vm261_vm1, %v914_v18 }
 0x444   : > { %v879_v9 = vpop.permute.xlu1 %878 }
 0x445   : > { %v887_v17 = vmul.f32 %v1374_v23, %v879_v9 }
 0x446   : > { %v796_v0 = vpop.permute.xlu0 %795 }
 0x447   : > { %1123 = vst.msk [vmem:[%s1517_s25 + $0x90] sm:$0xff] %vm261_vm1, %v887_v17  ;;  %v801_v37 = vmul.f32 %v1294_v3, %v796_v0 }
 0x449   : > { %1100 = vst.msk [vmem:[%s1517_s25 + $0x38] sm:$0xff] %vm261_vm1, %v801_v37 }
 0x44d   : > { %v937_v31 = vpop.permute.xlu1 %936 }
 0x44e   : > { %v945_v32 = vmul.f32 %v1382_v25, %v937_v31 }
 0x44f   : > { %v817_v38 = vpop.permute.xlu0 %816 }
 0x450   : > { %1139 = vst.msk [vmem:[%s1517_s25 + $0xd0] sm:$0xff] %vm261_vm1, %v945_v32  ;;  %v828_v39 = vmul.f32 %v1327_v12, %v817_v38 }
 0x452   : > { %1106 = vst.msk [vmem:[%s1517_s25 + $0x48] sm:$0xff] %vm261_vm1, %v828_v39 }
 0x456   : > { %v958_v23 = vpop.permute.xlu1 %957 }
 0x457   : > { %v972_v40 = vmul.f32 %v1417_v34, %v958_v23 }
 0x458   : > { %v854_v3 = vpop.permute.xlu0 %853 }
 0x459   : > { %1145 = vst.msk [vmem:[%s1517_s25 + $0xe0] sm:$0xff] %vm261_vm1, %v972_v40  ;;  %v859_v36 = vmul.f32 %v1302_v5, %v854_v3 }
 0x45b   : > { %1116 = vst.msk [vmem:[%s1517_s25 + $0x78] sm:$0xff] %vm261_vm1, %v859_v36 }
 0x45f   : > { %v758_v25 = vpop.permute.xlu1 %757 }
 0x460   : > { %v771_v35 = vmul.f32 %v758_v25, %v1319_v10 }
 0x461   : > { %v875_v12 = vpop.permute.xlu0 %874 }
 0x462   : > { %775 = vst.msk [vmem:[%s1517_s25 + $0x8] sm:$0xff] %vm261_vm1, %v771_v35  ;;  %v886_v44 = vmul.f32 %v1390_v27, %v875_v12 }
 0x464   : > { %1122 = vst.msk [vmem:[%s1517_s25 + $0x88] sm:$0xff] %vm261_vm1, %v886_v44 }
 0x467   : > { %v768_v34 = vpop.permute.xlu1 %767 }
 0x468   : > { %v773_v45 = vmul.f32 %v768_v34, %v1291_v2 }
 0x46a   : > { %777 = vst.msk [vmem:[%s1517_s25 + $0x18] sm:$0xff] %vm261_vm1, %v773_v45  ;;  %v933_v5 = vpop.permute.xlu0 %932 }
 0x46b   : > { %v944_v46 = vmul.f32 %v1398_v29, %v933_v5 }
 0x46d   : > { %1138 = vst.msk [vmem:[%s1517_s25 + $0xc8] sm:$0xff] %vm261_vm1, %v944_v46 }
 0x470   : > { %v788_v10 = vpop.permute.xlu1 %787 }
 0x471   : > { %v799_v47 = vmul.f32 %v1324_v11, %v788_v10 }
 0x473   : > { %1098 = vst.msk [vmem:[%s1517_s25 + $0x28] sm:$0xff] %vm261_vm1, %v799_v47  ;;  %v966_v27 = vpop.permute.xlu0 %965 }
 0x474   : > { %v974_v48 = vmul.f32 %v1385_v26, %v966_v27 }
 0x476   : > { %1147 = vst.msk [vmem:[%s1517_s25 + $0xf0] sm:$0xff] %vm261_vm1, %v974_v48 }
 0x479   : > { %v825_v2 = vpop.permute.xlu1 %824 }
 0x47a   : > { %v830_v49 = vmul.f32 %v1297_v4, %v825_v2 }
 0x47c   : > { %1108 = vst.msk [vmem:[%s1517_s25 + $0x58] sm:$0xff] %vm261_vm1, %v830_v49 }
 0x482   : > { %v846_v29 = vpop.permute.xlu1 %845 }
 0x483   : > { %v857_v50 = vmul.f32 %v1330_v13, %v846_v29 }
 0x485   : > { %1114 = vst.msk [vmem:[%s1517_s25 + $0x68] sm:$0xff] %vm261_vm1, %v857_v50 }
 0x48b   : > { %v883_v11 = vpop.permute.xlu1 %882 }
 0x48c   : > { %v888_v1 = vmul.f32 %v1358_v19, %v883_v11 }
 0x48e   : > { %1124 = vst.msk [vmem:[%s1517_s25 + $0x98] sm:$0xff] %vm261_vm1, %v888_v1 }
 0x494   : > { %v904_v26 = vpop.permute.xlu1 %903 }
 0x495   : > { %v915_v41 = vmul.f32 %v1393_v28, %v904_v26 }
 0x497   : > { %1130 = vst.msk [vmem:[%s1517_s25 + $0xa8] sm:$0xff] %vm261_vm1, %v915_v41 }
 0x49c   : > { %v912_v43 = vpop.permute.xlu1 %911 }
 0x49d   : > { %v917_v4 = vmul.f32 %v1361_v20, %v912_v43 }
 0x49f   : > { %1132 = vst.msk [vmem:[%s1517_s25 + $0xb8] sm:$0xff] %vm261_vm1, %v917_v4 }
 0x4a5   : > { %v970_v51 = vpop.permute.xlu1 %969 }
 0x4a6   : > { %v975_v13 = vmul.f32 %v1369_v22, %v970_v51 }
 0x4a8   : > { %1148 = vst.msk [vmem:[%s1517_s25 + $0xf8] sm:$0xff] %vm261_vm1, %v975_v13 }
 0x4a9 PF: > { %s15_s18 = sadd.s32 1, %s1226_s18  }
 0x4aa   : > { %p12_p4 = scmp.ge.s32.totalorder %s15_s18, 4  }
 0x4ac   :  { %14 = sbr.rel (!%p12_p4) target bundleno = 1 (0x1), region = 84 }

</bundles_post_ra>
